<compile_context>
chip_gen: v7x
topology: tpu7x:2x2x1
jax: 0.10.0
libtpu: 0.0.40
codegen_flags: <defaults>
</compile_context>

<pallas_src>
import functools

import jax
import jax.numpy as jnp
from jax.experimental import pallas as pl
from jax.experimental.pallas import tpu as pltpu


def _stock_mixer_loss_kernel(
    pred_ref, gt_ref, base_ref,          # inputs, each (1, Bp) resident in VMEM
    scal_ref, rr_ref,                    # outputs: (1,128) scalars, (1,TILE) rr block
    reg_acc_ref, rank_acc_ref,           # (1,1) VMEM scratch accumulators
    *, batch_size: int, alpha: float, tile: int, padded: bool):
  tj = pl.program_id(0)                  # column (lane) tile  -- outer grid axis
  ti = pl.program_id(1)                  # row (sublane) tile  -- inner grid axis
  nj = pl.num_programs(0)
  ni = pl.num_programs(1)

  BIG = jnp.float32(1e18)
  lane = jax.lax.broadcasted_iota(jnp.int32, (1, tile), 1)

  j_off = tj * tile
  i_off = ti * tile
  j_ds = pl.multiple_of(j_off, tile)
  i_ds = pl.multiple_of(i_off, tile)

  # ---- lane-oriented (column-tile) slices at tj ----------------------------
  pred_j = pred_ref[:, pl.ds(j_ds, tile)]
  gt_j = gt_ref[:, pl.ds(j_ds, tile)]
  base_j = base_ref[:, pl.ds(j_ds, tile)]
  rr_j = (pred_j - base_j) * pl.reciprocal(base_j, approx=False)   # (1, tile)

  # ---- row-tile slices at ti (still lane-oriented for now) -----------------
  pred_i = pred_ref[:, pl.ds(i_ds, tile)]
  gt_i = gt_ref[:, pl.ds(i_ds, tile)]
  base_i = base_ref[:, pl.ds(i_ds, tile)]
  rr_i = (pred_i - base_i) * pl.reciprocal(base_i, approx=False)   # (1, tile)

  if padded:
    valid_j = (lane + j_off) < batch_size
    valid_i = (lane + i_off) < batch_size
    # Sentinel masking: any pair that touches a padded index gets a product
    # <= 0 and is removed by the relu -- no mask on the TILExTILE tensors.
    rr_j_pw = jnp.where(valid_j, rr_j, BIG)
    gt_j_pw = jnp.where(valid_j, gt_j, -BIG)
    rr_i_pw = jnp.where(valid_i, rr_i, BIG)
    gt_i_pw = jnp.where(valid_i, gt_i, -BIG)
    rr_j_out = jnp.where(valid_j, rr_j, 0.0)
    d_j = jnp.where(valid_j, rr_j - gt_j, 0.0)
  else:
    rr_j_pw, gt_j_pw = rr_j, gt_j
    rr_i_pw, gt_i_pw = rr_i, gt_i
    rr_j_out = rr_j
    d_j = rr_j - gt_j

  # lane -> sublane orientation via broadcast + square transpose (XLU).
  rr_i_mat = jnp.transpose(jnp.broadcast_to(rr_i_pw, (tile, tile)))  # rows vary
  gt_i_mat = jnp.transpose(jnp.broadcast_to(gt_i_pw, (tile, tile)))

  @pl.when(jnp.logical_and(tj == 0, ti == 0))
  def _init():
    reg_acc_ref[...] = jnp.zeros_like(reg_acc_ref)
    rank_acc_ref[...] = jnp.zeros_like(rank_acc_ref)

  # ---- pairwise ranking partial sum for this TILE x TILE tile ---------------
  pre_pw = rr_i_mat - rr_j_pw            # broadcast (1,tile) along sublanes
  gt_pw = gt_i_mat - gt_j_pw
  prod = jnp.maximum(pre_pw * gt_pw, 0.0)
  rank_acc_ref[...] += jnp.sum(prod, keepdims=True)

  # ---- once per column tile: lane-dense rr output + regression partial ------
  @pl.when(ti == ni - 1)
  def _per_column_tile():
    rr_ref[...] = rr_j_out
    reg_acc_ref[...] += jnp.sum(d_j * d_j, keepdims=True)

  # ---- finalize: pack the three scalars into one (1,128) lane-dense slab ----
  @pl.when(jnp.logical_and(tj == nj - 1, ti == ni - 1))
  def _finalize():
    inv_b = jnp.float32(1.0 / batch_size)
    reg_loss = reg_acc_ref[...] * inv_b                   # (1,1)
    rank_loss = rank_acc_ref[...] * (inv_b * inv_b)       # (1,1)
    total = reg_loss + jnp.float32(alpha) * rank_loss     # (1,1)
    lane128 = jax.lax.broadcasted_iota(jnp.int32, (1, 128), 1)
    out = jnp.where(lane128 == 0, jnp.broadcast_to(total, (1, 128)),
          jnp.where(lane128 == 1, jnp.broadcast_to(reg_loss, (1, 128)),
          jnp.where(lane128 == 2, jnp.broadcast_to(rank_loss, (1, 128)),
                    jnp.float32(0.0))))
    scal_ref[...] = out


def stock_mixer_loss(prediction, ground_truth, base_price, alpha: float = 0.1):
  """Returns (total_loss, reg_loss, rank_loss, return_ratio) like the nn.Module."""
  B = prediction.shape[0]
  tile = 128 if B <= 1024 else 512          # bigger tiles for large batches
  n_tiles = max(1, (B + tile - 1) // tile)
  Bp = n_tiles * tile
  padded = Bp != B

  def pad_row(x, pad_value):
    x = jnp.asarray(x, jnp.float32).reshape(1, B)
    if padded:
      x = jnp.pad(x, ((0, 0), (0, Bp - B)), constant_values=pad_value)
    return x

  pred = pad_row(prediction, 0.0)
  gt = pad_row(ground_truth, 0.0)
  base = pad_row(base_price, 1.0)           # avoid div-by-zero in padded lanes

  kernel = functools.partial(
      _stock_mixer_loss_kernel,
      batch_size=B, alpha=float(alpha), tile=tile, padded=padded)

  full_spec = pl.BlockSpec((1, Bp), lambda j, i: (0, 0))     # resident, 1 DMA
  rr_spec = pl.BlockSpec((1, tile), lambda j, i: (0, j))     # lane-dense blocks
  scal_spec = pl.BlockSpec((1, 128), lambda j, i: (0, 0))    # single scalar slab

  scalars, rr = pl.pallas_call(
      kernel,
      grid=(n_tiles, n_tiles),
      in_specs=[full_spec, full_spec, full_spec],
      out_specs=(scal_spec, rr_spec),
      out_shape=(
          jax.ShapeDtypeStruct((1, 128), jnp.float32),
          jax.ShapeDtypeStruct((1, Bp), jnp.float32),
      ),
      scratch_shapes=[
          pltpu.VMEM((1, 1), jnp.float32),   # reg partial sum
          pltpu.VMEM((1, 1), jnp.float32),   # rank partial sum
      ],
      compiler_params=pltpu.CompilerParams(
          # Both grid axes carry the scratch accumulators -> sequential.
          dimension_semantics=("arbitrary", "arbitrary"),
          vmem_limit_bytes=32 * 1024 * 1024),
  )(pred, gt, base)

  total = scalars[0, 0]
  reg = scalars[0, 1]
  rank = scalars[0, 2]
  return_ratio = rr[0, :B].reshape(B, 1)
  return total, reg, rank, return_ratio


def _reference(prediction, ground_truth, base_price, alpha):
  rr = (prediction - base_price) / base_price
  reg = jnp.mean((rr - ground_truth) ** 2)
  pre_pw = rr - rr.T
  gt_pw = ground_truth - ground_truth.T
  rank = jnp.mean(jnp.maximum(pre_pw * gt_pw, 0.0))
  total = reg + alpha * rank
  return total, reg, rank, rr


def _check(B, key, alpha=0.1):
  k1, k2, k3 = jax.random.split(key, 3)
  base_price = jax.random.uniform(k1, (B, 1), jnp.float32, 50.0, 150.0)
  ground_truth = 0.02 * jax.random.normal(k2, (B, 1), jnp.float32)
  prediction = base_price * (
      1.0 + ground_truth + 0.01 * jax.random.normal(k3, (B, 1), jnp.float32))

  total, reg, rank, rr = stock_mixer_loss(
      prediction, ground_truth, base_price, alpha=alpha)
  jax.block_until_ready((total, reg, rank, rr))

  total_r, reg_r, rank_r, rr_r = _reference(
      prediction, ground_truth, base_price, alpha)

  assert jnp.allclose(rr, rr_r, rtol=1e-5, atol=1e-6)
  assert jnp.allclose(reg, reg_r, rtol=1e-5, atol=1e-6)
  assert jnp.allclose(rank, rank_r, rtol=1e-5, atol=1e-6)
  assert jnp.allclose(total, total_r, rtol=1e-5, atol=1e-6)


if __name__ == "__main__":
  key = jax.random.PRNGKey(0)
  k_small, k_multi = jax.random.split(key)
  _check(B=8, key=k_small)      # single-tile path
  _check(B=200, key=k_multi)    # multi-tile path with lane padding / sentinels
  print("KERNEL_OK")
</pallas_src>

<mosaic_0001>
module attributes {stable_mosaic.version = 11 : i64} {
  func.func @_stock_mixer_loss_kernel(%arg0: i32, %arg1: i32, %arg2: memref<1x128xf32, #tpu.memory_space<vmem>>, %arg3: memref<1x128xf32, #tpu.memory_space<vmem>>, %arg4: memref<1x128xf32, #tpu.memory_space<vmem>>, %arg5: memref<1x128xf32, #tpu.memory_space<vmem>>, %arg6: memref<1x128xf32, #tpu.memory_space<vmem>>, %arg7: memref<1x1xf32, #tpu.memory_space<vmem>>, %arg8: memref<1x1xf32, #tpu.memory_space<vmem>>) attributes {dimension_semantics = [#tpu.dimension_semantics<arbitrary>, #tpu.dimension_semantics<arbitrary>], iteration_bounds = array<i64: 1, 1>, scalar_prefetch = 0 : i64, scratch_operands = 2 : i64, tpu.core_type = #tpu.core_type<tc>, window_params = [{pipeline_mode = #tpu.pipeline_mode<synchronous>, transform_indices = @transform_0, window_bounds = array<i64: 1, 128>}, {pipeline_mode = #tpu.pipeline_mode<synchronous>, transform_indices = @transform_1, window_bounds = array<i64: 1, 128>}, {pipeline_mode = #tpu.pipeline_mode<synchronous>, transform_indices = @transform_2, window_bounds = array<i64: 1, 128>}, {pipeline_mode = #tpu.pipeline_mode<synchronous>, transform_indices = @transform_3, window_bounds = array<i64: 1, 128>}, {transform_indices = @transform_4, window_bounds = array<i64: 1, 128>}]} {
    %0 = tpu.iota {dimensions = array<i32: 1>} : vector<1x128xi32>
    %c128_i32 = arith.constant 128 : i32
    %1 = arith.muli %arg0, %c128_i32 : i32
    %c128_i32_0 = arith.constant 128 : i32
    %2 = arith.muli %arg1, %c128_i32_0 : i32
    %3 = tpu.assume_multiple %1, 128 : i32
    %4 = tpu.assume_multiple %2, 128 : i32
    %c0 = arith.constant 0 : index
    %5 = arith.index_cast %3 : i32 to index
    %6 = vector.load %arg2[%c0, %5] : memref<1x128xf32, #tpu.memory_space<vmem>>, vector<1x128xf32>
    %c0_1 = arith.constant 0 : index
    %7 = arith.index_cast %3 : i32 to index
    %8 = vector.load %arg3[%c0_1, %7] : memref<1x128xf32, #tpu.memory_space<vmem>>, vector<1x128xf32>
    %c0_2 = arith.constant 0 : index
    %9 = arith.index_cast %3 : i32 to index
    %10 = vector.load %arg4[%c0_2, %9] : memref<1x128xf32, #tpu.memory_space<vmem>>, vector<1x128xf32>
    %11 = arith.subf %6, %10 : vector<1x128xf32>
    %12 = tpu.reciprocal %10 : vector<1x128xf32> -> vector<1x128xf32>
    %13 = arith.mulf %11, %12 : vector<1x128xf32>
    %c0_3 = arith.constant 0 : index
    %14 = arith.index_cast %4 : i32 to index
    %15 = vector.load %arg2[%c0_3, %14] : memref<1x128xf32, #tpu.memory_space<vmem>>, vector<1x128xf32>
    %c0_4 = arith.constant 0 : index
    %16 = arith.index_cast %4 : i32 to index
    %17 = vector.load %arg3[%c0_4, %16] : memref<1x128xf32, #tpu.memory_space<vmem>>, vector<1x128xf32>
    %c0_5 = arith.constant 0 : index
    %18 = arith.index_cast %4 : i32 to index
    %19 = vector.load %arg4[%c0_5, %18] : memref<1x128xf32, #tpu.memory_space<vmem>>, vector<1x128xf32>
    %20 = arith.subf %15, %19 : vector<1x128xf32>
    %21 = tpu.reciprocal %19 : vector<1x128xf32> -> vector<1x128xf32>
    %22 = arith.mulf %20, %21 : vector<1x128xf32>
    %23 = vector.broadcast %1 : i32 to vector<1x128xi32>
    %24 = arith.addi %0, %23 : vector<1x128xi32>
    %c8_i32 = arith.constant 8 : i32
    %25 = vector.broadcast %c8_i32 : i32 to vector<1x128xi32>
    %26 = arith.cmpi slt, %24, %25 : vector<1x128xi32>
    %27 = vector.broadcast %2 : i32 to vector<1x128xi32>
    %28 = arith.addi %0, %27 : vector<1x128xi32>
    %c8_i32_6 = arith.constant 8 : i32
    %29 = vector.broadcast %c8_i32_6 : i32 to vector<1x128xi32>
    %30 = arith.cmpi slt, %28, %29 : vector<1x128xi32>
    %cst = arith.constant 9.99999984E+17 : f32
    %31 = vector.broadcast %cst : f32 to vector<1x128xf32>
    %32 = arith.select %26, %13, %31 : vector<1x128xi1>, vector<1x128xf32>
    %cst_7 = arith.constant 0.000000e+00 : f32
    %cst_8 = arith.constant 9.99999984E+17 : f32
    %33 = arith.subf %cst_7, %cst_8 : f32
    %34 = vector.broadcast %33 : f32 to vector<1x128xf32>
    %35 = arith.select %26, %8, %34 : vector<1x128xi1>, vector<1x128xf32>
    %cst_9 = arith.constant 9.99999984E+17 : f32
    %36 = vector.broadcast %cst_9 : f32 to vector<1x128xf32>
    %37 = arith.select %30, %22, %36 : vector<1x128xi1>, vector<1x128xf32>
    %cst_10 = arith.constant 0.000000e+00 : f32
    %cst_11 = arith.constant 9.99999984E+17 : f32
    %38 = arith.subf %cst_10, %cst_11 : f32
    %39 = vector.broadcast %38 : f32 to vector<1x128xf32>
    %40 = arith.select %30, %17, %39 : vector<1x128xi1>, vector<1x128xf32>
    %cst_12 = arith.constant 0.000000e+00 : f32
    %41 = vector.broadcast %cst_12 : f32 to vector<1x128xf32>
    %42 = arith.select %26, %13, %41 : vector<1x128xi1>, vector<1x128xf32>
    %43 = arith.subf %13, %8 : vector<1x128xf32>
    %cst_13 = arith.constant 0.000000e+00 : f32
    %44 = vector.broadcast %cst_13 : f32 to vector<1x128xf32>
    %45 = arith.select %26, %43, %44 : vector<1x128xi1>, vector<1x128xf32>
    %46 = vector.shape_cast %37 : vector<1x128xf32> to vector<1x128xf32>
    %47 = vector.broadcast %46 : vector<1x128xf32> to vector<128x128xf32>
    %48 = tpu.transpose %47, [1, 0] : vector<128x128xf32> -> vector<128x128xf32>
    %49 = vector.shape_cast %40 : vector<1x128xf32> to vector<1x128xf32>
    %50 = vector.broadcast %49 : vector<1x128xf32> to vector<128x128xf32>
    %51 = tpu.transpose %50, [1, 0] : vector<128x128xf32> -> vector<128x128xf32>
    %c0_i32 = arith.constant 0 : i32
    %52 = arith.cmpi eq, %arg0, %c0_i32 : i32
    %c0_i32_14 = arith.constant 0 : i32
    %53 = arith.cmpi eq, %arg1, %c0_i32_14 : i32
    %54 = arith.andi %52, %53 : i1
    %55 = arith.extui %54 : i1 to i32
    %c0_i32_15 = arith.constant 0 : i32
    %56 = arith.cmpi ne, %55, %c0_i32_15 : i32
    scf.if %56 {
      %cst_27 = arith.constant 0.000000e+00 : f32
      %80 = vector.broadcast %cst_27 : f32 to vector<1x1xf32>
      %c0_28 = arith.constant 0 : index
      %c0_29 = arith.constant 0 : index
      %81 = vector.load %arg7[%c0_28, %c0_29] : memref<1x1xf32, #tpu.memory_space<vmem>>, vector<1x1xf32>
      tpu.vector_store %arg7[%c0_28, %c0_29], %80 {strides = array<i32>} : memref<1x1xf32, #tpu.memory_space<vmem>>, vector<1x1xf32>,
      %cst_30 = arith.constant 0.000000e+00 : f32
      %82 = vector.broadcast %cst_30 : f32 to vector<1x1xf32>
      %c0_31 = arith.constant 0 : index
      %c0_32 = arith.constant 0 : index
      %83 = vector.load %arg8[%c0_31, %c0_32] : memref<1x1xf32, #tpu.memory_space<vmem>>, vector<1x1xf32>
      tpu.vector_store %arg8[%c0_31, %c0_32], %82 {strides = array<i32>} : memref<1x1xf32, #tpu.memory_space<vmem>>, vector<1x1xf32>,
    } else {
    }
    %57 = vector.broadcast %32 : vector<1x128xf32> to vector<128x128xf32>
    %58 = arith.subf %48, %57 : vector<128x128xf32>
    %59 = vector.broadcast %35 : vector<1x128xf32> to vector<128x128xf32>
    %60 = arith.subf %51, %59 : vector<128x128xf32>
    %61 = arith.mulf %58, %60 : vector<128x128xf32>
    %cst_16 = arith.constant 0.000000e+00 : f32
    %62 = vector.broadcast %cst_16 : f32 to vector<128x128xf32>
    %63 = arith.maximumf %61, %62 : vector<128x128xf32>
    %c0_17 = arith.constant 0 : index
    %c0_18 = arith.constant 0 : index
    %64 = vector.load %arg8[%c0_17, %c0_18] : memref<1x1xf32, #tpu.memory_space<vmem>>, vector<1x1xf32>
    %65 = vector.shape_cast %63 : vector<128x128xf32> to vector<1x128x128xf32>
    %cst_19 = arith.constant dense<0.000000e+00> : vector<1xf32>
    %66 = vector.multi_reduction <add>, %65, %cst_19 [1, 2] : vector<1x128x128xf32> to vector<1xf32>
    %67 = vector.shape_cast %66 : vector<1xf32> to vector<1x1x1xf32>
    %68 = vector.extract %67[0, 0, 0] : f32 from vector<1x1x1xf32>
    %69 = vector.broadcast %68 : f32 to vector<1x1xf32>
    %70 = arith.addf %64, %69 : vector<1x1xf32>
    %c0_20 = arith.constant 0 : index
    %c0_21 = arith.constant 0 : index
    %71 = vector.load %arg8[%c0_20, %c0_21] : memref<1x1xf32, #tpu.memory_space<vmem>>, vector<1x1xf32>
    tpu.vector_store %arg8[%c0_20, %c0_21], %70 {strides = array<i32>} : memref<1x1xf32, #tpu.memory_space<vmem>>, vector<1x1xf32>,
    %c0_i32_22 = arith.constant 0 : i32
    %72 = arith.cmpi eq, %arg1, %c0_i32_22 : i32
    %73 = arith.extui %72 : i1 to i32
    %c0_i32_23 = arith.constant 0 : i32
    %74 = arith.cmpi ne, %73, %c0_i32_23 : i32
    scf.if %74 {
      %c0_27 = arith.constant 0 : index
      %c0_28 = arith.constant 0 : index
      %80 = vector.load %arg6[%c0_27, %c0_28] : memref<1x128xf32, #tpu.memory_space<vmem>>, vector<1x128xf32>
      tpu.vector_store %arg6[%c0_27, %c0_28], %42 {strides = array<i32>} : memref<1x128xf32, #tpu.memory_space<vmem>>, vector<1x128xf32>,
      %c0_29 = arith.constant 0 : index
      %c0_30 = arith.constant 0 : index
      %81 = vector.load %arg7[%c0_29, %c0_30] : memref<1x1xf32, #tpu.memory_space<vmem>>, vector<1x1xf32>
      %82 = arith.mulf %45, %45 : vector<1x128xf32>
      %83 = vector.shape_cast %82 : vector<1x128xf32> to vector<1x1x128xf32>
      %cst_31 = arith.constant dense<0.000000e+00> : vector<1xf32>
      %84 = vector.multi_reduction <add>, %83, %cst_31 [1, 2] : vector<1x1x128xf32> to vector<1xf32>
      %85 = vector.shape_cast %84 : vector<1xf32> to vector<1x1x1xf32>
      %86 = vector.extract %85[0, 0, 0] : f32 from vector<1x1x1xf32>
      %87 = vector.broadcast %86 : f32 to vector<1x1xf32>
      %88 = arith.addf %81, %87 : vector<1x1xf32>
      %c0_32 = arith.constant 0 : index
      %c0_33 = arith.constant 0 : index
      %89 = vector.load %arg7[%c0_32, %c0_33] : memref<1x1xf32, #tpu.memory_space<vmem>>, vector<1x1xf32>
      tpu.vector_store %arg7[%c0_32, %c0_33], %88 {strides = array<i32>} : memref<1x1xf32, #tpu.memory_space<vmem>>, vector<1x1xf32>,
    } else {
    }
    %c0_i32_24 = arith.constant 0 : i32
    %75 = arith.cmpi eq, %arg0, %c0_i32_24 : i32
    %c0_i32_25 = arith.constant 0 : i32
    %76 = arith.cmpi eq, %arg1, %c0_i32_25 : i32
    %77 = arith.andi %75, %76 : i1
    %78 = arith.extui %77 : i1 to i32
    %c0_i32_26 = arith.constant 0 : i32
    %79 = arith.cmpi ne, %78, %c0_i32_26 : i32
    scf.if %79 {
      %c0_27 = arith.constant 0 : index
      %c0_28 = arith.constant 0 : index
      %80 = vector.load %arg7[%c0_27, %c0_28] : memref<1x1xf32, #tpu.memory_space<vmem>>, vector<1x1xf32>
      %cst_29 = arith.constant 1.250000e-01 : f32
      %81 = vector.broadcast %cst_29 : f32 to vector<1x1xf32>
      %82 = arith.mulf %80, %81 : vector<1x1xf32>
      %c0_30 = arith.constant 0 : index
      %c0_31 = arith.constant 0 : index
      %83 = vector.load %arg8[%c0_30, %c0_31] : memref<1x1xf32, #tpu.memory_space<vmem>>, vector<1x1xf32>
      %cst_32 = arith.constant 1.250000e-01 : f32
      %cst_33 = arith.constant 1.250000e-01 : f32
      %84 = arith.mulf %cst_32, %cst_33 : f32
      %85 = vector.broadcast %84 : f32 to vector<1x1xf32>
      %86 = arith.mulf %83, %85 : vector<1x1xf32>
      %cst_34 = arith.constant 1.000000e-01 : f32
      %87 = vector.broadcast %cst_34 : f32 to vector<1x1xf32>
      %88 = arith.mulf %87, %86 : vector<1x1xf32>
      %89 = arith.addf %82, %88 : vector<1x1xf32>
      %90 = tpu.iota {dimensions = array<i32: 1>} : vector<1x128xi32>
      %c0_i32_35 = arith.constant 0 : i32
      %91 = vector.broadcast %c0_i32_35 : i32 to vector<1x128xi32>
      %92 = arith.cmpi eq, %90, %91 : vector<1x128xi32>
      %93 = vector.shape_cast %89 : vector<1x1xf32> to vector<1x1xf32>
      %94 = vector.broadcast %93 : vector<1x1xf32> to vector<1x128xf32>
      %c1_i32 = arith.constant 1 : i32
      %95 = vector.broadcast %c1_i32 : i32 to vector<1x128xi32>
      %96 = arith.cmpi eq, %90, %95 : vector<1x128xi32>
      %97 = vector.shape_cast %82 : vector<1x1xf32> to vector<1x1xf32>
      %98 = vector.broadcast %97 : vector<1x1xf32> to vector<1x128xf32>
      %c2_i32 = arith.constant 2 : i32
      %99 = vector.broadcast %c2_i32 : i32 to vector<1x128xi32>
      %100 = arith.cmpi eq, %90, %99 : vector<1x128xi32>
      %101 = vector.shape_cast %86 : vector<1x1xf32> to vector<1x1xf32>
      %102 = vector.broadcast %101 : vector<1x1xf32> to vector<1x128xf32>
      %cst_36 = arith.constant 0.000000e+00 : f32
      %103 = vector.broadcast %cst_36 : f32 to vector<1x128xf32>
      %104 = arith.select %100, %102, %103 : vector<1x128xi1>, vector<1x128xf32>
      %105 = arith.select %96, %98, %104 : vector<1x128xi1>, vector<1x128xf32>
      %106 = arith.select %92, %94, %105 : vector<1x128xi1>, vector<1x128xf32>
      %c0_37 = arith.constant 0 : index
      %c0_38 = arith.constant 0 : index
      %107 = vector.load %arg5[%c0_37, %c0_38] : memref<1x128xf32, #tpu.memory_space<vmem>>, vector<1x128xf32>
      tpu.vector_store %arg5[%c0_37, %c0_38], %106 {strides = array<i32>} : memref<1x128xf32, #tpu.memory_space<vmem>>, vector<1x128xf32>,
    } else {
    }
    return
  }
  func.func @transform_0(%arg0: i32, %arg1: i32) -> (i32, i32) {
    %c0_i32 = arith.constant 0 : i32
    %c0_i32_0 = arith.constant 0 : i32
    %c0_i32_1 = arith.constant 0 : i32
    return %c0_i32, %c0_i32_0 : i32, i32
  }
  func.func @transform_1(%arg0: i32, %arg1: i32) -> (i32, i32) {
    %c0_i32 = arith.constant 0 : i32
    %c0_i32_0 = arith.constant 0 : i32
    %c0_i32_1 = arith.constant 0 : i32
    return %c0_i32, %c0_i32_0 : i32, i32
  }
  func.func @transform_2(%arg0: i32, %arg1: i32) -> (i32, i32) {
    %c0_i32 = arith.constant 0 : i32
    %c0_i32_0 = arith.constant 0 : i32
    %c0_i32_1 = arith.constant 0 : i32
    return %c0_i32, %c0_i32_0 : i32, i32
  }
  func.func @transform_3(%arg0: i32, %arg1: i32) -> (i32, i32) {
    %c0_i32 = arith.constant 0 : i32
    %c0_i32_0 = arith.constant 0 : i32
    %c0_i32_1 = arith.constant 0 : i32
    return %c0_i32, %c0_i32_0 : i32, i32
  }
  func.func @transform_4(%arg0: i32, %arg1: i32) -> (i32, i32) {
    %c0_i32 = arith.constant 0 : i32
    %c0_i32_0 = arith.constant 0 : i32
    return %c0_i32, %arg0 : i32, i32
  }
}

</mosaic_0001>

<bundles_post_ra>
// kernel: tpu_custom_call.1
= control target key start
LH: loop header
LB: loop body
LE: loop exit
PB: predicated region body
PF: predicated region fallthrough
CT: control target
= control target key end

     0   :  { %10 = vsyncpa [#allocation5], 0  ;;  %s585_s0 = inlined_call_operand.hbm [shape: f32[1,128], index: 0, kind: input, shape index: {}]   ;;  %s586_s1 = inlined_call_operand.vmem [shape: f32[1,128], index: 1, kind: input, shape index: {}]   ;;  %s587_s2 = inlined_call_operand.vmem [shape: f32[1,128], index: 2, kind: input, shape index: {}]   ;;  %s588_s3 = inlined_call_operand.hbm [shape: f32[1,128], index: 3, kind: output, shape index: {0}]   ;;  %s589_s4 = inlined_call_operand.hbm [shape: f32[1,128], index: 4, kind: output, shape index: {1}]  }
   0x1   :  { %11 = vsyncpa [#allocation6], 0 }
   0x2   :  { %12 = vsyncpa [#allocation9], 0  ;;  %s435_s15 = smov [#allocation4]   ;;  %s363_s19 = scalar_lea.hbm %s585_s0, 16 }
   0x3   :  { %s19_s16 = sshll.u32 %s435_s15, 4  ;;  %p364_p0 = scmp.ne.s32.totalorder %s585_s0, %s363_s19  ;;  %s20_s16 = int_to_ptr.vmem [resolvable:$true] %s19_s16 }
   0x4   :  { %p367_p1 = scmp.lt.u32.totalorder %s363_s19, %s585_s0 }
   0x6   :  { %p369_p2 = pnand %p367_p1, %p364_p0 }
   0x8   :  { %372 = shalt.err (!%p369_p2)
}
   0x9   :  { %s373_s24 = scalar_lea.vmem %s20_s16, 16  ;;  %s377_s25 = scalar_lea.vmem %s20_s16, 32 }
   0xa   :  { %p374_p3 = scmp.ne.s32.totalorder %s20_s16, %s373_s24  ;;  %p378_p4 = scmp.lt.s32.totalorder %s20_s16, %s20_s16 }
   0xb   :  { %p379_p5 = scmp.lt.s32.totalorder %s377_s25, %s373_s24 }
   0xd   :  { %p380_p6 = por %p379_p5, %p378_p4 }
   0xf   :  { %p381_p7 = pnand %p380_p6, %p374_p3 }
  0x11   :  { %384 = shalt.err (!%p381_p7)
}
  0x12   :  { %22 = dma.hbm_to_vmem [thread:$0]  %s585_s0, 16, %s20_s16, [#allocation5]  }
  0x13   :  { %429 = dma.done.wait [#allocation5], 16  }
  0x14   :  { %430 = vsyncadd [#allocation5], 4294967280  ;;  %v30_v0 = vlaneseq  ;;  %v50_v4 = vld [vmem:[%s586_s1] sm:$0x1]  ;;  %v48_v8 = vld [vmem:[#allocation4] sm:$0x1] }
  0x15   :  { %v52_v5 = vld [vmem:[%s587_s2] sm:$0x1]  ;;  %v37_v15 = vld [vmem:[#allocation4] sm:$0x1]  ;;  %vm257_vm1 = vcmask 1040384   ;;  %vm147_vm2 = vcmask 0  }
  0x16   :  { %v477_v1 = vand.u32 127, %v30_v0  ;;  %v70_v2 = vshrl.u32 %v30_v0, 7  ;;  %359 = vrcp.f32 %v52_v5  ;;  %v53_v9 = vsub.f32 %v48_v8, %v52_v5  ;;  %v41_v14 = vld [vmem:[%s587_s2] sm:$0x1]  ;;  %s438_s9 = smov [#allocation8]  }
  0x17   :  { %361 = vrcp.f32 %v41_v14  ;;  %v42_v16 = vsub.f32 %v37_v15, %v41_v14  ;;  %v39_v19 = vld [vmem:[%s586_s1] sm:$0x1]  ;;  %s329_s10 = sshll.u32 %s438_s9, 4  ;;  %s330_s10 = int_to_ptr.vmem [resolvable:$true] %s329_s10 }
  0x18   :  { %vm58_vm0 = vcmp.lt.s32.totalorder %v477_v1, 8  ;;  %v480_v3 = vsub.s32 0, %v70_v2  ;;  %s385_s11 = scalar_lea.vmem %s330_s10, 16  ;;  %s389_s12 = scalar_lea.vmem %s330_s10, 32 }
  0x19   :  { %v65_v6 = vsel %vm58_vm0, %v50_v4, -1e+18  ;;  %v63_v38 = vsel %vm58_vm0, %v39_v19, -1e+18  ;;  %p386_p8 = scmp.ne.s32.totalorder %s330_s10, %s385_s11  ;;  %p390_p9 = scmp.lt.s32.totalorder %s330_s10, %s330_s10 }
  0x1a   :  { %v108_v7 = vrot.slane %v65_v6, %v480_v3  ;;  %v511_v41 = vrot.slane %v63_v38, %v480_v3  ;;  %p391_p10 = scmp.lt.s32.totalorder %s389_s12, %s385_s11 }
  0x1c   :  { %109 = vxpose.xlu1.b32.start [1/16] %v108_v7, 128  ;;  %p392_p11 = por %p391_p10, %p390_p9 }
  0x1e   :  { %p393_p12 = pnand %p392_p11, %p386_p8 }
  0x20   :  { %110 = vxpose.xlu1.b32.cont [2/16] %v108_v7, 128  ;;  %v360_v10 = vpop.eup %359 }
  0x21   :  { %v55_v11 = vmul.f32 %v360_v10, %v53_v9  ;;  %v362_v17 = vpop.eup %361 }
  0x22   :  { %v497_v18 = vmul.f32 %v362_v17, %v42_v16 }
  0x23   :  { %v64_v12 = vsel %vm58_vm0, %v55_v11, 1e+18 }
  0x24   :  { %111 = vxpose.xlu1.b32.cont [3/16] %v108_v7, 128  ;;  %v72_v13 = vrot.slane %v64_v12, %v480_v3  ;;  %v67_v20 = vsub.f32 %v497_v18, %v39_v19  ;;  %v62_v39 = vsel %vm58_vm0, %v497_v18, 1e+18 }
  0x25   :  { %v514_v42 = vrot.slane %v62_v39, %v480_v3 }
  0x26   :  { %73 = vxpose.xlu0.b32.start [1/16] %v72_v13, 128  ;;  %v68_v21 = vsel %vm58_vm0, %v67_v20, 0.0 }
  0x27   :  { %v256_v22 = vmul.f32 %v68_v21, %v68_v21 }
  0x28   :  { %112 = vxpose.xlu1.b32.cont [4/16] %v108_v7, 128 }
  0x29   :  { %v258_v23 = vsel %vm257_vm1, %v256_v22, 0.0 }
  0x2a   :  { %74 = vxpose.xlu0.b32.cont [2/16] %v72_v13, 128 }
  0x2c   :  { %113 = vxpose.xlu1.b32.cont [5/16] %v108_v7, 128 }
  0x2e   :  { %75 = vxpose.xlu0.b32.cont [3/16] %v72_v13, 128 }
  0x30   :  { %114 = vxpose.xlu1.b32.cont [6/16] %v108_v7, 128 }
  0x32   :  { %76 = vxpose.xlu0.b32.cont [4/16] %v72_v13, 128 }
  0x34   :  { %115 = vxpose.xlu1.b32.cont [7/16] %v108_v7, 128 }
  0x36   :  { %77 = vxpose.xlu0.b32.cont [5/16] %v72_v13, 128 }
  0x38   :  { %116 = vxpose.xlu1.b32.cont [8/16] %v108_v7, 128 }
  0x3a   :  { %78 = vxpose.xlu0.b32.cont [6/16] %v72_v13, 128 }
  0x3c   :  { %117 = vxpose.xlu1.b32.cont [9/16] %v108_v7, 128 }
  0x3e   :  { %79 = vxpose.xlu0.b32.cont [7/16] %v72_v13, 128 }
  0x40   :  { %118 = vxpose.xlu1.b32.cont [10/16] %v108_v7, 128 }
  0x42   :  { %80 = vxpose.xlu0.b32.cont [8/16] %v72_v13, 128 }
  0x44   :  { %119 = vxpose.xlu1.b32.cont [11/16] %v108_v7, 128 }
  0x46   :  { %81 = vxpose.xlu0.b32.cont [9/16] %v72_v13, 128 }
  0x48   :  { %120 = vxpose.xlu1.b32.cont [12/16] %v108_v7, 128 }
  0x4a   :  { %82 = vxpose.xlu0.b32.cont [10/16] %v72_v13, 128 }
  0x4c   :  { %121 = vxpose.xlu1.b32.cont [13/16] %v108_v7, 128 }
  0x4e   :  { %83 = vxpose.xlu0.b32.cont [11/16] %v72_v13, 128 }
  0x50   :  { %122 = vxpose.xlu1.b32.cont [14/16] %v108_v7, 128 }
  0x52   :  { %84 = vxpose.xlu0.b32.cont [12/16] %v72_v13, 128 }
  0x54   :  { %123 = vxpose.xlu1.b32.cont [15/16] %v108_v7, 128 }
  0x56   :  { %85 = vxpose.xlu0.b32.cont [13/16] %v72_v13, 128 }
  0x58   :  { %124 = vxpose.xlu1.b32.end [16/16] %v108_v7, 128 }
  0x5a   :  { %86 = vxpose.xlu0.b32.cont [14/16] %v72_v13, 128 }
  0x5e   :  { %87 = vxpose.xlu0.b32.cont [15/16] %v72_v13, 128 }
  0x62   :  { %88 = vxpose.xlu0.b32.end [16/16] %v72_v13, 128 }
  0x7f   :  { %259 = vadd.xlane.f32.xlu1 %v258_v23 }
  0x9c   :  { %v125_v24 = vpop.trf.xlu1 }
  0x9d   :  { %v174_v47 = vsub.f32 %v125_v24, %v511_v41 }
  0xa0   :  { %v126_v25 = vpop.trf.xlu1 }
  0xa1   :  { %v175_v45 = vsub.f32 %v126_v25, %v511_v41 }
  0xa4   :  { %v127_v26 = vpop.trf.xlu1 }
  0xa5   :  { %v176_v50 = vsub.f32 %v127_v26, %v511_v41 }
  0xa6   :  { %v89_v28 = vpop.trf.xlu0 }
  0xa7   :  { %v154_v48 = vsub.f32 %v89_v28, %v514_v42 }
  0xa8   :  { %v128_v27 = vpop.trf.xlu1 }
  0xa9   :  { %v177_v54 = vsub.f32 %v128_v27, %v511_v41  ;;  %v190_v56 = vmul.f32 %v174_v47, %v154_v48 }
  0xaa   :  { %v90_v30 = vpop.trf.xlu0 }
  0xab   :  { %v155_v46 = vsub.f32 %v90_v30, %v514_v42  ;;  %v206_v4 = vmax.f32 %v190_v56, 0.0 }
  0xac   :  { %v129_v29 = vpop.trf.xlu1 }
  0xad   :  { %v191_v53 = vmul.f32 %v175_v45, %v155_v46  ;;  %v178_v58 = vsub.f32 %v129_v29, %v511_v41 }
  0xae   :  { %v91_v32 = vpop.trf.xlu0 }
  0xaf   :  { %v156_v51 = vsub.f32 %v91_v32, %v514_v42  ;;  %v207_v62 = vmax.f32 %v191_v53, 0.0 }
  0xb0   :  { %v130_v31 = vpop.trf.xlu1 }
  0xb1   :  { %v192_v57 = vmul.f32 %v176_v50, %v156_v51  ;;  %v179_v0 = vsub.f32 %v130_v31, %v511_v41  ;;  %v223_v10 = vadd.f32 %v207_v62, %v206_v4 }
  0xb2   :  { %v92_v34 = vpop.trf.xlu0 }
  0xb3   :  { %v157_v55 = vsub.f32 %v92_v34, %v514_v42  ;;  %v208_v5 = vmax.f32 %v192_v57, 0.0 }
  0xb4   :  { %v131_v33 = vpop.trf.xlu1 }
  0xb5   :  { %v193_v63 = vmul.f32 %v177_v54, %v157_v55  ;;  %v180_v7 = vsub.f32 %v131_v33, %v511_v41  ;;  %v224_v16 = vadd.f32 %v223_v10, %v208_v5 }
  0xb6   :  { %v93_v36 = vpop.trf.xlu0 }
  0xb7   :  { %v158_v59 = vsub.f32 %v93_v36, %v514_v42  ;;  %v209_v11 = vmax.f32 %v193_v63, 0.0 }
  0xb8   :  { %v132_v35 = vpop.trf.xlu1 }
  0xb9   :  { %v194_v6 = vmul.f32 %v178_v58, %v158_v59  ;;  %v181_v14 = vsub.f32 %v132_v35, %v511_v41  ;;  %v225_v23 = vadd.f32 %v224_v16, %v209_v11 }
  0xba   :  { %v94_v40 = vpop.trf.xlu0 }
  0xbb   :  { %v159_v2 = vsub.f32 %v94_v40, %v514_v42  ;;  %v210_v17 = vmax.f32 %v194_v6, 0.0 }
  0xbc   :  { %v133_v37 = vpop.trf.xlu1 }
  0xbd   :  { %v195_v12 = vmul.f32 %v179_v0, %v159_v2  ;;  %v182_v21 = vsub.f32 %v133_v37, %v511_v41  ;;  %v226_v28 = vadd.f32 %v225_v23, %v210_v17 }
  0xbe   :  { %v95_v44 = vpop.trf.xlu0 }
  0xbf   :  { %v160_v8 = vsub.f32 %v95_v44, %v514_v42  ;;  %v211_v24 = vmax.f32 %v195_v12, 0.0 }
  0xc0   :  { %v134_v43 = vpop.trf.xlu1 }
  0xc1   :  { %v196_v19 = vmul.f32 %v180_v7, %v160_v8  ;;  %v183_v26 = vsub.f32 %v134_v43, %v511_v41  ;;  %v227_v35 = vadd.f32 %v226_v28, %v211_v24 }
  0xc2   :  { %v96_v52 = vpop.trf.xlu0 }
  0xc3   :  { %v161_v15 = vsub.f32 %v96_v52, %v514_v42  ;;  %v212_v29 = vmax.f32 %v196_v19, 0.0  ;;  %v436_v19 = vmov 0.0  }
  0xc4   :  { %v135_v49 = vpop.trf.xlu1  ;;  %149 = vst.msk [vmem:[#allocation3] sm:$0x1] %vm147_vm2, %v436_v19  ;;  %148 = vst.msk [vmem:[#allocation2] sm:$0x1] %vm147_vm2, %v436_v19 }
  0xc5   :  { %v197_v25 = vmul.f32 %v181_v14, %v161_v15  ;;  %v184_v33 = vsub.f32 %v135_v49, %v511_v41  ;;  %v228_v40 = vadd.f32 %v227_v35, %v212_v29 }
  0xc6   :  { %v97_v60 = vpop.trf.xlu0 }
  0xc7   :  { %v162_v22 = vsub.f32 %v97_v60, %v514_v42  ;;  %v213_v36 = vmax.f32 %v197_v25, 0.0 }
  0xc8   :  { %v136_v61 = vpop.trf.xlu1 }
  0xc9   :  { %v198_v32 = vmul.f32 %v182_v21, %v162_v22  ;;  %v185_v38 = vsub.f32 %v136_v61, %v511_v41  ;;  %v229_v50 = vadd.f32 %v228_v40, %v213_v36 }
  0xca   :  { %v98_v9 = vpop.trf.xlu0 }
  0xcb   :  { %v163_v27 = vsub.f32 %v98_v9, %v514_v42  ;;  %v214_v44 = vmax.f32 %v198_v32, 0.0 }
  0xcc   :  { %v137_v13 = vpop.trf.xlu1 }
  0xcd   :  { %v199_v37 = vmul.f32 %v183_v26, %v163_v27  ;;  %v186_v46 = vsub.f32 %v137_v13, %v511_v41  ;;  %v230_v54 = vadd.f32 %v229_v50, %v214_v44 }
  0xce   :  { %v99_v20 = vpop.trf.xlu0 }
  0xcf   :  { %v164_v34 = vsub.f32 %v99_v20, %v514_v42  ;;  %v215_v49 = vmax.f32 %v199_v37, 0.0  ;;  %v437_v20 = vmov 0  }
  0xd0   :  { %v138_v31 = vpop.trf.xlu1  ;;  %357 = vset.pattern.permute.xlu1 %v437_v20  ;;  %358 = vset.pattern.permute.xlu0 %v437_v20 }
  0xd1   :  { %v200_v45 = vmul.f32 %v184_v33, %v164_v34  ;;  %v187_v52 = vsub.f32 %v138_v31, %v511_v41  ;;  %v231_v58 = vadd.f32 %v230_v54, %v215_v49  ;;  %v222_v33 = vld [vmem:[#allocation3] sm:$0x1]  ;;  %v255_v34 = vld [vmem:[#allocation2] sm:$0x1] }
  0xd2   :  { %v100_v30 = vpop.trf.xlu0 }
  0xd3   :  { %v165_v39 = vsub.f32 %v100_v30, %v514_v42  ;;  %v216_v55 = vmax.f32 %v200_v45, 0.0 }
  0xd4   :  { %v139_v48 = vpop.trf.xlu1 }
  0xd5   :  { %v201_v51 = vmul.f32 %v185_v38, %v165_v39  ;;  %v188_v61 = vsub.f32 %v139_v48, %v511_v41  ;;  %v232_v0 = vadd.f32 %v231_v58, %v216_v55 }
  0xd6   :  { %v101_v43 = vpop.trf.xlu0 }
  0xd7   :  { %v166_v47 = vsub.f32 %v101_v43, %v514_v42  ;;  %v217_v59 = vmax.f32 %v201_v51, 0.0 }
  0xd8   :  { %v140_v63 = vpop.trf.xlu1 }
  0xd9   :  { %v202_v56 = vmul.f32 %v186_v46, %v166_v47  ;;  %v233_v5 = vadd.f32 %v232_v0, %v217_v59  ;;  %v189_v8 = vsub.f32 %v140_v63, %v511_v41  ;;  %v66_v47 = vsel %vm58_vm0, %v497_v18, 0.0 }
  0xda   :  { %v102_v53 = vpop.trf.xlu0  ;;  %254 = vst [vmem:[#allocation8] sm:$0x1] %v66_v47 }
  0xdb   :  { %v167_v57 = vsub.f32 %v102_v53, %v514_v42  ;;  %v218_v2 = vmax.f32 %v202_v56, 0.0 }
  0xdd   :  { %v203_v60 = vmul.f32 %v187_v52, %v167_v57  ;;  %v234_v10 = vadd.f32 %v233_v5, %v218_v2 }
  0xde   :  { %v103_v62 = vpop.trf.xlu0 }
  0xdf   :  { %v168_v4 = vsub.f32 %v103_v62, %v514_v42  ;;  %v219_v6 = vmax.f32 %v203_v60, 0.0 }
  0xe1   :  { %v204_v7 = vmul.f32 %v188_v61, %v168_v4  ;;  %v235_v13 = vadd.f32 %v234_v10, %v219_v6 }
  0xe2   :  { %v104_v9 = vpop.trf.xlu0 }
  0xe3   :  { %v220_v11 = vmax.f32 %v204_v7, 0.0  ;;  %v169_v12 = vsub.f32 %v104_v9, %v514_v42 }
  0xe5   :  { %v205_v14 = vmul.f32 %v189_v8, %v169_v12  ;;  %v236_v16 = vadd.f32 %v235_v13, %v220_v11 }
  0xe7   :  { %v221_v15 = vmax.f32 %v205_v14, 0.0 }
  0xe9   :  { %v237_v17 = vadd.f32 %v236_v16, %v221_v15 }
  0xeb   :  { %238 = vadd.xlane.f32.xlu0 %v237_v17 }
 0x10c   :  { %v260_v41 = vpop.xlane.xlu1 %259 }
 0x10d   :  { %v261_v21 = vrot.slane %v260_v41, 4 }
 0x10f   :  { %v262_v22 = vadd.f32 %v261_v21, %v260_v41 }
 0x111   :  { %v263_v23 = vrot.slane %v262_v22, 2 }
 0x113   :  { %v264_v26 = vadd.f32 %v263_v23, %v262_v22 }
 0x115   :  { %v265_v29 = vrot.slane %v264_v26, 1 }
 0x117   :  { %v266_v32 = vadd.f32 %v265_v29, %v264_v26 }
 0x178   :  { %v239_v42 = vpop.xlane.xlu0 %238 }
 0x179   :  { %v240_v24 = vrot.slane %v239_v42, 4 }
 0x17b   :  { %v241_v25 = vadd.f32 %v240_v24, %v239_v42 }
 0x17d   :  { %v242_v27 = vrot.slane %v241_v25, 2 }
 0x17f   :  { %v243_v28 = vadd.f32 %v242_v27, %v241_v25 }
 0x181   :  { %v244_v30 = vrot.slane %v243_v28, 1 }
 0x183   :  { %v245_v31 = vadd.f32 %v244_v30, %v243_v28 }
 0x185   :  { %348 = vpush %v245_v31 }
 0x186   :  { %350 = vpush %v266_v32 }
 0x1b6   :  { %s349_s1 = spop %348 }
 0x1b7   :  { %v247_v35 = vstv %s349_s1  ;;  %s351_s2 = spop %350 }
 0x1b8   :  { %v248_v36 = vadd.f32 %v247_v35, %v222_v33  ;;  %v268_v37 = vstv %s351_s2 }
 0x1b9   :  { %v269_v38 = vadd.f32 %v268_v37, %v255_v34 }
 0x1ba   :  { %250 = vst.msk [vmem:[#allocation3] sm:$0x1] %vm147_vm2, %v248_v36 }
 0x1bb   :  { %270 = vst.msk [vmem:[#allocation2] sm:$0x1] %vm147_vm2, %v269_v38 }
 0x1c1   :  { %v275_v39 = vld [vmem:[#allocation3] sm:$0x1] }
 0x1c2   :  { %v273_v40 = vld [vmem:[#allocation2] sm:$0x1]  ;;  %v276_v43 = vmul.f32 0.015625, %v275_v39 }
 0x1c3   :  { %v274_v44 = vmul.f32 0.125, %v273_v40 }
 0x1c4   :  { %302 = vperm.xlu1 %357, %v276_v43   ;;  %v277_v45 = vmul.f32 0.1, %v276_v43 }
 0x1c5   :  { %292 = vperm.xlu0 %358, %v274_v44  }
 0x1c6   :  { %v278_v46 = vadd.f32 %v277_v45, %v274_v44 }
 0x1c8   :  { %282 = vperm.xlu1 %357, %v278_v46  }
 0x1c9   :  { %396 = shalt.err (!%p393_p12)
}
 0x1ca   :  { %s397_s15 = scalar_lea.hbm %s589_s4, 16 }
 0x1cb   :  { %p398_p13 = scmp.ne.s32.totalorder %s589_s4, %s397_s15  ;;  %p401_p0 = scmp.lt.u32.totalorder %s397_s15, %s589_s4 }
 0x1cd   :  { %p403_p1 = pnand %p401_p0, %p398_p13 }
 0x1cf   :  { %406 = shalt.err (!%p403_p1)
}
 0x1d0   :  { %332 = dma.vmem_to_hbm [thread:$0]  %s330_s10, 16, %s589_s4, [#allocation9]   ;;  %vm299_vm3 = vcmp.eq.s32.totalorder %v477_v1, 2  ;;  %vm289_vm4 = vcmp.eq.s32.totalorder %v477_v1, 1  ;;  %vm279_vm5 = vcmp.eq.s32.totalorder %v477_v1, 0 }
 0x1d1   :  { %s439_s22 = smov [#allocation7]  }
 0x1d2   :  { %s319_s23 = sshll.u32 %s439_s22, 4  ;;  %s320_s23 = int_to_ptr.vmem [resolvable:$true] %s319_s23 }
 0x1d3   :  { %s407_s4 = scalar_lea.vmem %s320_s23, 16  ;;  %s411_s24 = scalar_lea.vmem %s320_s23, 32 }
 0x1d4   :  { %p408_p2 = scmp.ne.s32.totalorder %s320_s23, %s407_s4  ;;  %p412_p3 = scmp.lt.s32.totalorder %s320_s23, %s320_s23 }
 0x1d5   :  { %p413_p4 = scmp.lt.s32.totalorder %s411_s24, %s407_s4 }
 0x1d7   :  { %p414_p5 = por %p413_p4, %p412_p3 }
 0x1d9   :  { %p415_p6 = pnand %p414_p5, %p408_p2 }
 0x243   :  { %v303_v18 = vpop.permute.xlu1 %302 }
 0x244   :  { %v293_v48 = vpop.permute.xlu0 %292  ;;  %v308_v50 = vrot.slane %v303_v18, %v480_v3 }
 0x245   :  { %v298_v49 = vrot.slane %v293_v48, %v480_v3 }
 0x246   :  { %v309_v51 = vsel %vm299_vm3, %v308_v50, 0.0 }
 0x247   :  { %v283_v52 = vpop.permute.xlu1 %282  ;;  %v310_v54 = vsel %vm289_vm4, %v298_v49, %v309_v51 }
 0x248   :  { %v288_v53 = vrot.slane %v283_v52, %v480_v3 }
 0x24a   :  { %v311_v55 = vsel %vm279_vm5, %v288_v53, %v310_v54 }
 0x24b   :  { %312 = vst [vmem:[#allocation7] sm:$0x1] %v311_v55 }
 0x24c   :  { %418 = shalt.err (!%p415_p6)
}
 0x24d   :  { %s419_s27 = scalar_lea.hbm %s588_s3, 16 }
 0x24e   :  { %p420_p7 = scmp.ne.s32.totalorder %s588_s3, %s419_s27  ;;  %p423_p8 = scmp.lt.u32.totalorder %s419_s27, %s588_s3 }
 0x250   :  { %p425_p9 = pnand %p423_p8, %p420_p7 }
 0x252   :  { %428 = shalt.err (!%p425_p9)
}
 0x253   :  { %322 = dma.vmem_to_hbm [thread:$0]  %s320_s23, 16, %s588_s3, [#allocation6]  }
 0x254   :  { %431 = dma.done.wait [#allocation6], 16  }
 0x255   :  { %432 = vsyncadd [#allocation6], 4294967280 }
 0x256   :  { %433 = dma.done.wait [#allocation9], 16  }
 0x257   :  { %434 = vsyncadd [#allocation9], 4294967280 }
 0x258   :  { %339 = vsyncpa [#allocation5], 1 }
 0x259   :  { %340 = vsyncpa [#allocation6], 1 }
 0x25a   :  { %341 = vsyncpa [#allocation9], 1 }

</bundles_post_ra>
